<compile_context>
chip_gen: v5e
topology: v5e:2x2
jax: 0.10.0
libtpu: 0.0.40
codegen_flags: <defaults>
</compile_context>

<pallas_src>
import jax
import jax.numpy as jnp
from jax.experimental import pallas as pl
from jax.experimental.pallas import tpu as pltpu

_LANES = 128
_MIN_PALLAS_BYTES = 2 << 20  # below ~2 MiB total, fused XLA beats a kernel launch


def _drop_path_kernel(scale_ref, x_ref, o_ref):
    # scale_ref: (B,) f32 in SMEM (scalar prefetch); per-sample mask/keep_prob.
    # x_ref / o_ref: (1, TR, 128) lane-dense VMEM tile of the current sample.
    b = pl.program_id(0)
    o_ref[...] = x_ref[...] * scale_ref[b].astype(x_ref.dtype)


def _sublane(itemsize: int) -> int:
    # 8 for f32, 16 for bf16, 32 for i8 (packed-dtype sublane tiling).
    return max(8, 32 // itemsize)


def _target_block_bytes() -> int:
    """Per-block byte target. 4 MiB on v6e/v7x, 2 MiB on v5e.

    The kernel is HBM-bound; the only lever is amortizing the ~0.35 us/step
    grid overhead with the biggest block that comfortably fits scoped VMEM:
      4 MiB blocks -> (in + out) x 2 buffers = 16 MiB (fits v6e/v7x scoped).
      2 MiB blocks -> 8 MiB (v5e's default scoped VMEM is only 16 MiB).
    """
    try:
        kind = jax.devices()[0].device_kind.lower()
    except Exception:
        kind = ""
    if "v5" in kind:
        return 2 << 20
    return 4 << 20


def _choose_tile_rows(rows: int, itemsize: int, batch: int):
    """Pick a row-tile size (sublane-aligned or full-extent) and tile count."""
    sub = _sublane(itemsize)
    target_rows = max(sub, _target_block_bytes() // (_LANES * itemsize))
    if rows <= target_rows:
        tr = rows                                   # whole sample per block
    else:
        tr = max(sub, (target_rows // sub) * sub)   # sublane-aligned tile
    num_row_tiles = pl.cdiv(rows, tr)

    # v7x has 2 TensorCores: avoid grids with a single (or odd, tiny) step
    # count by splitting each sample into two row-blocks when possible.
    # Harmless on 1-TC chips (one extra ~0.35 us step per sample).
    if num_row_tiles == 1 and (batch % 2 == 1) and rows >= 2 * sub:
        half = pl.cdiv(rows, 2)
        tr = ((half + sub - 1) // sub) * sub
        num_row_tiles = pl.cdiv(rows, tr)
    return tr, num_row_tiles


def _drop_path_jax(x, scale):
    bshape = (x.shape[0],) + (1,) * (x.ndim - 1)
    return x * scale.reshape(bshape).astype(x.dtype)


def drop_path(x, drop_prob: float = 0.0, training: bool = False, key=None,
              force_pallas: bool = False):
    """JAX/Pallas equivalent of the PyTorch drop_path()."""
    if drop_prob == 0.0 or not training:
        return x
    if drop_prob >= 1.0:
        # PyTorch would divide by keep_prob == 0 (inf/NaN); everything is
        # dropped, so zeros is the sensible deterministic result.
        return jnp.zeros_like(x)
    if key is None:
        raise ValueError(
            "drop_path(training=True, drop_prob>0) requires an explicit PRNG "
            "key; JAX RNG is stateless (reusing a fixed key would drop the "
            "same samples every step).")

    keep_prob = 1.0 - drop_prob
    b = x.shape[0]

    # Per-sample scale: floor(keep_prob + U[0,1)) in {0,1}, divided by keep_prob.
    u = jax.random.uniform(key, (b,), dtype=jnp.float32)
    scale = (jnp.floor(keep_prob + u) / keep_prob).astype(jnp.float32)

    # Per-sample element count.
    n = 1
    for d in x.shape[1:]:
        n *= d
    itemsize = jnp.dtype(x.dtype).itemsize
    total_bytes = b * n * itemsize

    # Non-lane-divisible payloads or small payloads: plain JAX (XLA fuses the
    # broadcast multiply into neighboring ops; a standalone kernel would lose).
    if (n % _LANES != 0) or (not force_pallas and total_bytes < _MIN_PALLAS_BYTES):
        return _drop_path_jax(x, scale)

    rows = n // _LANES
    tr, num_row_tiles = _choose_tile_rows(rows, itemsize, b)
    x3 = x.reshape(b, rows, _LANES)

    # Explicit scoped-VMEM budget: (in + out) double-buffered + headroom.
    block_bytes = tr * _LANES * itemsize
    vmem_limit = max(4 * block_bytes + (2 << 20), 16 << 20)

    out = pl.pallas_call(
        _drop_path_kernel,
        out_shape=jax.ShapeDtypeStruct(x3.shape, x3.dtype),
        grid_spec=pltpu.PrefetchScalarGridSpec(
            num_scalar_prefetch=1,
            grid=(b, num_row_tiles),
            in_specs=[pl.BlockSpec((1, tr, _LANES), lambda i, r, s_ref: (i, r, 0))],
            out_specs=pl.BlockSpec((1, tr, _LANES), lambda i, r, s_ref: (i, r, 0)),
        ),
        compiler_params=pltpu.CompilerParams(
            dimension_semantics=("parallel", "parallel"),
            vmem_limit_bytes=vmem_limit),
        cost_estimate=pl.CostEstimate(
            flops=b * n,
            transcendentals=0,
            bytes_accessed=2 * total_bytes + b * 4),
    )(scale, x3)

    return out.reshape(x.shape)


class DropPath:
    """Drop paths (Stochastic Depth) per sample, matching the PyTorch module."""

    def __init__(self, drop_prob=None):
        self.drop_prob = drop_prob
        self.training = True

    def __call__(self, x, key=None):
        p = 0.0 if self.drop_prob is None else self.drop_prob
        return drop_path(x, p, self.training, key=key)


if __name__ == "__main__":
    key = jax.random.PRNGKey(0)
    kx, km, kx2, kx3 = jax.random.split(key, 4)

    drop_prob = 0.25
    keep_prob = 1.0 - drop_prob
    module = DropPath(drop_prob)
    module.training = True

    # 1) Transformer-block activation shape from M4CEA: (batch, tokens, d_model).
    #    Small payload, so force the Pallas path to exercise the kernel.
    x = jax.random.normal(kx, (2, 64, 512), dtype=jnp.float32)
    y = drop_path(x, drop_prob, True, key=km, force_pallas=True)
    jax.block_until_ready(y)

    u = jax.random.uniform(km, (x.shape[0],), dtype=jnp.float32)
    scale_ref = (jnp.floor(keep_prob + u) / keep_prob).reshape(x.shape[0], 1, 1)
    ref = x * scale_ref
    assert jnp.allclose(y, ref, rtol=1e-6, atol=1e-6), "Pallas path mismatch"

    # 2) Batch of 1 -> exercises the megacore split (grid forced to 2 steps).
    x1 = jax.random.normal(kx3, (1, 64, 512), dtype=jnp.float32)
    y1 = drop_path(x1, drop_prob, True, key=km, force_pallas=True)
    jax.block_until_ready(y1)
    u1 = jax.random.uniform(km, (1,), dtype=jnp.float32)
    ref1 = x1 * (jnp.floor(keep_prob + u1) / keep_prob).reshape(1, 1, 1)
    assert jnp.allclose(y1, ref1, rtol=1e-6, atol=1e-6), "split-grid mismatch"

    # 3) Tiny NCHW input -> pure-JAX fallback path; must also match.
    xs = jax.random.normal(kx2, (2, 4, 16, 16), dtype=jnp.float32)
    ys = module(xs, key=km)
    us = jax.random.uniform(km, (xs.shape[0],), dtype=jnp.float32)
    scale_s = (jnp.floor(keep_prob + us) / keep_prob).reshape(xs.shape[0], 1, 1, 1)
    refs = xs * scale_s
    assert jnp.allclose(ys, refs, rtol=1e-6, atol=1e-6), "fallback mismatch"

    # 4) Eval mode (or drop_prob == 0): identity, no key needed.
    module.training = False
    y_eval = module(x)
    assert jnp.array_equal(y_eval, x), "eval mode must be identity"

    print("KERNEL_OK")
</pallas_src>

<mosaic_0001>
module attributes {stable_mosaic.version = 11 : i64} {
  func.func @_drop_path_kernel(%arg0: i32, %arg1: i32, %arg2: memref<2xf32, #tpu.memory_space<smem>>, %arg3: memref<1x256x128xf32, #tpu.memory_space<vmem>>, %arg4: memref<1x256x128xf32, #tpu.memory_space<vmem>>) attributes {dimension_semantics = [#tpu.dimension_semantics<parallel>, #tpu.dimension_semantics<parallel>], iteration_bounds = array<i64: 2, 1>, scalar_prefetch = 1 : i64, scratch_operands = 0 : i64, tpu.core_type = #tpu.core_type<tc>, window_params = [{transform_indices = @transform_0, window_bounds = array<i64: 1, 256, 128>}, {transform_indices = @transform_1, window_bounds = array<i64: 1, 256, 128>}]} {
    %c0 = arith.constant 0 : index
    %c0_0 = arith.constant 0 : index
    %c0_1 = arith.constant 0 : index
    %0 = vector.load %arg3[%c0, %c0_0, %c0_1] : memref<1x256x128xf32, #tpu.memory_space<vmem>>, vector<1x256x128xf32>
    %1 = arith.index_cast %arg0 : i32 to index
    %2 = memref.load %arg2[%1] : memref<2xf32, #tpu.memory_space<smem>>
    %3 = vector.broadcast %2 : f32 to vector<1x256x128xf32>
    %4 = arith.mulf %0, %3 : vector<1x256x128xf32>
    %c0_2 = arith.constant 0 : index
    %c0_3 = arith.constant 0 : index
    %c0_4 = arith.constant 0 : index
    %5 = vector.load %arg4[%c0_2, %c0_3, %c0_4] : memref<1x256x128xf32, #tpu.memory_space<vmem>>, vector<1x256x128xf32>
    tpu.vector_store %arg4[%c0_2, %c0_3, %c0_4], %4 {strides = array<i32>} : memref<1x256x128xf32, #tpu.memory_space<vmem>>, vector<1x256x128xf32>,
    return
  }
  func.func @transform_0(%arg0: i32, %arg1: i32, %arg2: memref<2xf32, #tpu.memory_space<smem>>) -> (i32, i32, i32) {
    %c0_i32 = arith.constant 0 : i32
    %c0_i32_0 = arith.constant 0 : i32
    return %arg0, %arg1, %c0_i32 : i32, i32, i32
  }
  func.func @transform_1(%arg0: i32, %arg1: i32, %arg2: memref<2xf32, #tpu.memory_space<smem>>) -> (i32, i32, i32) {
    %c0_i32 = arith.constant 0 : i32
    %c0_i32_0 = arith.constant 0 : i32
    return %arg0, %arg1, %c0_i32 : i32, i32, i32
  }
}

</mosaic_0001>

<bundles_post_ra>
// kernel: tpu_custom_call.1
= control target key start
LH: loop header
LB: loop body
LE: loop exit
PB: predicated region body
PF: predicated region fallthrough
CT: control target
= control target key end

     0   :  { %s581_s12 = smov [#allocation3]   ;;  %s828_s0 = inlined_call_operand.hbm [shape: f32[2], index: 0, kind: input, shape index: {}]   ;;  %s829_s1 = inlined_call_operand.hbm [shape: f32[2,256,128], index: 1, kind: input, shape index: {}]   ;;  %s830_s2 = inlined_call_operand.hbm [shape: f32[2,256,128], index: 2, kind: output, shape index: {}]  }
   0x1   :  { %s8_s11 = sshll.u32 %s828_s0, 4  ;;  %s9_s11 = int_to_ptr.hbm [resolvable:$true] %s8_s11 }
   0x2   :  { %11 = dma.hbm_to_smem %s9_s11, 16, %s581_s12, [#allocation2] }
   0x3   :  { %547 = dma.done.wait [#allocation2], 16 }
   0x4   :  { %548 = vsyncadd [#allocation2], 4294967280 }
   0x5   :  { %14 = sfence }
   0x6   :  { %15 = vsyncpa [#allocation5], 0 }
   0x7   :  { %17 = vsyncpa [#allocation5 + $0x1], 0 }
   0x8   :  { %18 = vsyncpa [#allocation6], 0 }
   0x9   :  { %20 = vsyncpa [#allocation6 + $0x1], 0  ;;  %s604_s13 = smov 0   ;;  %s606_s14 = smov 0  }
   0xa   :  { %s608_s15 = smov 0   ;;  %s610_s16 = smov 0  }
   0xb   :  { %s612_s17 = smov 0   ;;  %s614_s0 = smov 0  }
   0xc LB: > { %s369_s18 = sadd.s32 4294967295, %s579_s0   ;;  %s370_s19 = sadd.s32 4294967294, %s579_s0   ;;  %s579_s0 = sphi %s614_s0, %s26_s0   ;;  %s575_s17 = sphi %s612_s17, %s839_s17   ;;  %s571_s16 = sphi %s610_s16, %s838_s16   ;;  %s567_s15 = sphi %s608_s15, %s837_s15   ;;  %s563_s14 = sphi %s606_s14, %s836_s14   ;;  %s559_s13 = sphi %s604_s13, %s835_s13  }
   0xd   : > { %s38_s20 = sadd.s32 1, %s575_s17  ;;  %s47_s21 = sadd.s32 1, %s567_s15 }
   0xe   : > { %p40_p0 = scmp.ge.s32.totalorder %s38_s20, 2  ;;  %p54_p1 = scmp.ne.s32.totalorder %s567_s15, %s563_s14 }
   0xf   : > { %p55_p2 = scmp.eq.s32.totalorder %s579_s0, 0  ;;  %p60_p3 = scmp.ne.s32.totalorder %s563_s14, %s559_s13 }
  0x10   : > { %s841_s20 = smov (%p40_p0, %s38_s20), 0  ;;  %p61_p5 = scmp.eq.s32.totalorder %s369_s18, 0 }
  0x11   : > { %p645_p4 = por %p55_p2, %p54_p1  ;;  %s42_s23 = ssub.s32 %s575_s17, %s841_s20 }
  0x12   : > { %p86_p6 = scmp.eq.s32.totalorder %s369_s18, 1  ;;  %p45_p7 = scmp.eq.s32.totalorder %s42_s23, 0 }
  0x13   : > { %p651_p8 = por %p61_p5, %p60_p3  ;;  %p92_p10 = scmp.eq.s32.totalorder %s370_s19, 1 }
  0x14   : > { %p655_p9 = por %p86_p6, %p54_p1  ;;  %p372_p12 = scmp.ge.s32.totalorder %s579_s0, 2 }
  0x15   : > { %s660_s26 = scalar_select %p45_p7, %s567_s15, %s47_s21  }
  0x16   : > { %p662_p11 = por %p92_p10, %p60_p3  ;;  %p398_p13 = scmp.lt.s32.totalorder %s579_s0, 2 }
  0x17   : > { %s112_s28 = sand.u32 1, %s567_s15   ;;  %s384_s30 = sshll.u32 %s575_s17, 8 }
  0x18   : > { %s373_s29 = sshll.u32 %s112_s28, 8  ;;  %s123_s5 = scalar_lea.hbm %s829_s1, %s384_s30 }
  0x19   : > { %s116_s6 = scalar_lea.vmem [#allocation4], %s373_s29  ;;  %s124_s8 = sshll.u32 %s123_s5, 4  ;;  %s125_s8 = int_to_ptr.hbm [resolvable:$true] %s124_s8 }
  0x1a   : > { %s126_s7 = sshll.u32 %s116_s6, 4  ;;  %p391_p0 = pnand %p398_p13, %p645_p4  ;;  %s127_s7 = int_to_ptr.vmem [resolvable:$true] %s126_s7 }
  0x1b   : > { %p376_p1 = scmp.ge.s32.totalorder %s579_s0, 1  ;;  %s113_s9 = scalar_lea.sflag [#allocation5], %s112_s28 }
  0x1c   : > { %s582_s10 = smov 128   ;;  %s583_s11 = smov 8  }
  0x1d   : > { %393 = dma.hbm_to_vmem [thread:$0]  (!%p391_p0), %s125_s8, 4096, %s127_s7, %s113_s9, %s582_s10, %s582_s10, %s583_s11  }
  0x1e   : > { %p134_p2 = scmp.lt.s32.totalorder %s579_s0, 3 }
  0x20   : > { %p135_p3 = pnand %p376_p1, %p134_p2 }
  0x21   : > { %s678_s12 = sand.u32 (!%p135_p3), 1, %s563_s14  }
  0x22   : > { %138 = sbr.rel (%p135_p3) target bundleno = 84 (0x54), region = 24  ;;  %s377_s18 = sshll.u32 (!%p135_p3), %s678_s12, 8 }
  0x23   : > { %s141_s19 = scalar_lea.sflag (!%p135_p3), [#allocation5], %s678_s12  ;;  %s682_s21 = scalar_lea.vmem (!%p135_p3), [#allocation4], %s377_s18 }
  0x27   : > { %550 = dma.done.wait (%p651_p8), %s141_s19, 4096  }
  0x28   : > { %552 = vsyncadd (%p651_p8), %s141_s19, 4294963200  ;;  %s198_s22 = sld [smem:[#allocation3 + %s571_s16]]  ;;  %v166_v0 = vld [vmem:[%s682_s21] sm:$0xff]  ;;  %v167_v2 = vld [vmem:[%s682_s21 + $0x8] sm:$0xff]  ;;  %s702_s23 = scalar_lea.vmem [#allocation7], %s377_s18 }
  0x29   : > { %v168_v3 = vld [vmem:[%s682_s21 + $0x10] sm:$0xff]  ;;  %v169_v7 = vld [vmem:[%s682_s21 + $0x18] sm:$0xff]  ;;  %v170_v8 = vld [vmem:[%s682_s21 + $0x20] sm:$0xff]  ;;  %s385_s24 = sshll.u32 %s571_s16, 8  ;;  %s279_s30 = sshll.u32 %s702_s23, 4  ;;  %s280_s30 = int_to_ptr.vmem [resolvable:$true] %s279_s30 }
  0x2a   : > { %v171_v9 = vld [vmem:[%s682_s21 + $0x28] sm:$0xff]  ;;  %v172_v11 = vld [vmem:[%s682_s21 + $0x30] sm:$0xff]  ;;  %v173_v13 = vld [vmem:[%s682_s21 + $0x38] sm:$0xff]  ;;  %s278_s16 = scalar_lea.hbm %s830_s2, %s385_s24  ;;  %s265_s4 = scalar_lea.sflag [#allocation6], %s678_s12 }
  0x2b   : > { %v174_v15 = vld [vmem:[%s682_s21 + $0x40] sm:$0xff]  ;;  %v175_v17 = vld [vmem:[%s682_s21 + $0x48] sm:$0xff]  ;;  %v176_v19 = vld [vmem:[%s682_s21 + $0x50] sm:$0xff]  ;;  %s281_s3 = sshll.u32 %s278_s16, 4  ;;  %s515_s9 = scalar_lea.hbm %s830_s2, 512  ;;  %s282_s3 = int_to_ptr.hbm [resolvable:$true] %s281_s3 }
  0x2c   : > { %v177_v21 = vld [vmem:[%s682_s21 + $0x58] sm:$0xff]  ;;  %v178_v23 = vld [vmem:[%s682_s21 + $0x60] sm:$0xff]  ;;  %v179_v25 = vld [vmem:[%s682_s21 + $0x68] sm:$0xff]  ;;  %s509_s5 = sshra.s32 %s282_s3, 4  ;;  %s510_s5 = int_to_ptr.hbm [resolvable:$true] %s509_s5 }
  0x2d   : > { %v180_v27 = vld [vmem:[%s682_s21 + $0x70] sm:$0xff]  ;;  %v181_v29 = vld [vmem:[%s682_s21 + $0x78] sm:$0xff]  ;;  %v182_v31 = vld [vmem:[%s682_s21 + $0x80] sm:$0xff]  ;;  %s511_s6 = scalar_lea.hbm %s510_s5, 256  ;;  %p516_p7 = scmp.lt.s32.totalorder %s510_s5, %s830_s2 }
  0x2e   : > { %v690_v1 = vstv %s198_s22  ;;  %v183_v33 = vld [vmem:[%s682_s21 + $0x88] sm:$0xff]  ;;  %v184_v35 = vld [vmem:[%s682_s21 + $0x90] sm:$0xff]  ;;  %v185_v37 = vld [vmem:[%s682_s21 + $0x98] sm:$0xff]  ;;  %p512_p4 = scmp.ne.s32.totalorder %s510_s5, %s511_s6  ;;  %p517_p8 = scmp.lt.s32.totalorder %s515_s9, %s511_s6 }
  0x2f   : > { %v200_v4 = vmul.f32 %v690_v1, %v166_v0  ;;  %v201_v5 = vmul.f32 %v690_v1, %v167_v2  ;;  %v202_v6 = vmul.f32 %v690_v1, %v168_v3  ;;  %v203_v10 = vmul.f32 %v690_v1, %v169_v7  ;;  %v186_v39 = vld [vmem:[%s682_s21 + $0xa0] sm:$0xff]  ;;  %v187_v41 = vld [vmem:[%s682_s21 + $0xa8] sm:$0xff]  ;;  %v188_v43 = vld [vmem:[%s682_s21 + $0xb0] sm:$0xff] }
  0x30   : > { %v204_v12 = vmul.f32 %v690_v1, %v170_v8  ;;  %v205_v14 = vmul.f32 %v690_v1, %v171_v9  ;;  %v206_v16 = vmul.f32 %v690_v1, %v172_v11  ;;  %v207_v18 = vmul.f32 %v690_v1, %v173_v13  ;;  %v189_v45 = vld [vmem:[%s682_s21 + $0xb8] sm:$0xff]  ;;  %v190_v47 = vld [vmem:[%s682_s21 + $0xc0] sm:$0xff]  ;;  %v191_v49 = vld [vmem:[%s682_s21 + $0xc8] sm:$0xff]  ;;  %p513_p5 = pnand %p512_p4, %p655_p9  ;;  %p518_p10 = por %p517_p8, %p516_p7 }
  0x31   : > { %232 = vst [vmem:[%s702_s23] sm:$0xff] %v200_v4  ;;  %v208_v20 = vmul.f32 %v690_v1, %v174_v15  ;;  %v209_v22 = vmul.f32 %v690_v1, %v175_v17  ;;  %v210_v24 = vmul.f32 %v690_v1, %v176_v19  ;;  %v211_v26 = vmul.f32 %v690_v1, %v177_v21  ;;  %v192_v51 = vld [vmem:[%s682_s21 + $0xd0] sm:$0xff]  ;;  %v193_v53 = vld [vmem:[%s682_s21 + $0xd8] sm:$0xff]  ;;  %v194_v55 = vld [vmem:[%s682_s21 + $0xe0] sm:$0xff] }
  0x32   : > { %233 = vst [vmem:[%s702_s23 + $0x8] sm:$0xff] %v201_v5  ;;  %v212_v28 = vmul.f32 %v690_v1, %v178_v23  ;;  %v213_v30 = vmul.f32 %v690_v1, %v179_v25  ;;  %v214_v32 = vmul.f32 %v690_v1, %v180_v27  ;;  %v215_v34 = vmul.f32 %v690_v1, %v181_v29  ;;  %v195_v57 = vld [vmem:[%s682_s21 + $0xe8] sm:$0xff]  ;;  %v196_v59 = vld [vmem:[%s682_s21 + $0xf0] sm:$0xff]  ;;  %v197_v61 = vld [vmem:[%s682_s21 + $0xf8] sm:$0xff]  ;;  %p514_p6 = pneg %p513_p5 }
  0x33   : > { %234 = vst [vmem:[%s702_s23 + $0x10] sm:$0xff] %v202_v6  ;;  %v216_v36 = vmul.f32 %v690_v1, %v182_v31  ;;  %v217_v38 = vmul.f32 %v690_v1, %v183_v33  ;;  %v218_v40 = vmul.f32 %v690_v1, %v184_v35  ;;  %v219_v42 = vmul.f32 %v690_v1, %v185_v37 }
  0x34   : > { %235 = vst [vmem:[%s702_s23 + $0x18] sm:$0xff] %v203_v10  ;;  %v220_v44 = vmul.f32 %v690_v1, %v186_v39  ;;  %v221_v46 = vmul.f32 %v690_v1, %v187_v41  ;;  %v222_v48 = vmul.f32 %v690_v1, %v188_v43  ;;  %v223_v50 = vmul.f32 %v690_v1, %v189_v45  ;;  %p519_p13 = pnand %p518_p10, %p514_p6 }
  0x35   : > { %236 = vst [vmem:[%s702_s23 + $0x20] sm:$0xff] %v204_v12  ;;  %v224_v52 = vmul.f32 %v690_v1, %v190_v47  ;;  %v225_v54 = vmul.f32 %v690_v1, %v191_v49  ;;  %v226_v56 = vmul.f32 %v690_v1, %v192_v51  ;;  %v227_v58 = vmul.f32 %v690_v1, %v193_v53 }
  0x36   : > { %237 = vst [vmem:[%s702_s23 + $0x28] sm:$0xff] %v205_v14  ;;  %v228_v60 = vmul.f32 %v690_v1, %v194_v55  ;;  %v229_v62 = vmul.f32 %v690_v1, %v195_v57  ;;  %v230_v63 = vmul.f32 %v690_v1, %v196_v59  ;;  %v231_v0 = vmul.f32 %v690_v1, %v197_v61 }
  0x37   : > { %238 = vst [vmem:[%s702_s23 + $0x30] sm:$0xff] %v206_v16 }
  0x38   : > { %239 = vst [vmem:[%s702_s23 + $0x38] sm:$0xff] %v207_v18 }
  0x39   : > { %240 = vst [vmem:[%s702_s23 + $0x40] sm:$0xff] %v208_v20 }
  0x3a   : > { %241 = vst [vmem:[%s702_s23 + $0x48] sm:$0xff] %v209_v22 }
  0x3b   : > { %242 = vst [vmem:[%s702_s23 + $0x50] sm:$0xff] %v210_v24 }
  0x3c   : > { %243 = vst [vmem:[%s702_s23 + $0x58] sm:$0xff] %v211_v26 }
  0x3d   : > { %244 = vst [vmem:[%s702_s23 + $0x60] sm:$0xff] %v212_v28 }
  0x3e   : > { %245 = vst [vmem:[%s702_s23 + $0x68] sm:$0xff] %v213_v30 }
  0x3f   : > { %246 = vst [vmem:[%s702_s23 + $0x70] sm:$0xff] %v214_v32 }
  0x40   : > { %247 = vst [vmem:[%s702_s23 + $0x78] sm:$0xff] %v215_v34 }
  0x41   : > { %248 = vst [vmem:[%s702_s23 + $0x80] sm:$0xff] %v216_v36 }
  0x42   : > { %249 = vst [vmem:[%s702_s23 + $0x88] sm:$0xff] %v217_v38 }
  0x43   : > { %250 = vst [vmem:[%s702_s23 + $0x90] sm:$0xff] %v218_v40 }
  0x44   : > { %251 = vst [vmem:[%s702_s23 + $0x98] sm:$0xff] %v219_v42 }
  0x45   : > { %252 = vst [vmem:[%s702_s23 + $0xa0] sm:$0xff] %v220_v44 }
  0x46   : > { %253 = vst [vmem:[%s702_s23 + $0xa8] sm:$0xff] %v221_v46 }
  0x47   : > { %254 = vst [vmem:[%s702_s23 + $0xb0] sm:$0xff] %v222_v48 }
  0x48   : > { %255 = vst [vmem:[%s702_s23 + $0xb8] sm:$0xff] %v223_v50 }
  0x49   : > { %256 = vst [vmem:[%s702_s23 + $0xc0] sm:$0xff] %v224_v52 }
  0x4a   : > { %257 = vst [vmem:[%s702_s23 + $0xc8] sm:$0xff] %v225_v54 }
  0x4b   : > { %258 = vst [vmem:[%s702_s23 + $0xd0] sm:$0xff] %v226_v56 }
  0x4c   : > { %259 = vst [vmem:[%s702_s23 + $0xd8] sm:$0xff] %v227_v58 }
  0x4d   : > { %260 = vst [vmem:[%s702_s23 + $0xe0] sm:$0xff] %v228_v60 }
  0x4e   : > { %261 = vst [vmem:[%s702_s23 + $0xe8] sm:$0xff] %v229_v62 }
  0x4f   : > { %262 = vst [vmem:[%s702_s23 + $0xf0] sm:$0xff] %v230_v63 }
  0x50   : > { %263 = vst [vmem:[%s702_s23 + $0xf8] sm:$0xff] %v231_v0 }
  0x51   : > { %522 = shalt.err (!%p519_p13)
}
  0x52   : > { %s584_s12 = smov 128   ;;  %s585_s18 = smov 8  }
  0x53   : > { %388 = dma.vmem_to_hbm [thread:$0]  (%p655_p9), %s280_s30, 4096, %s282_s3, %s265_s4, %s584_s12, %s584_s12, %s585_s18  }
  0x54 PF: > { %s296_s19 = sand.u32 1, %s559_s13   ;;  %p395_p0 = pnand %p372_p12, %p662_p11 }
  0x55   : > { %s297_s21 = scalar_lea.sflag [#allocation6], %s296_s19 }
  0x56   : > { %p396_p1 = pneg %p395_p0 }
  0x58   : > { %554 = dma.done.wait (%p396_p1), %s297_s21, 4096  }
  0x59   : > { %556 = vsyncadd (%p396_p1), %s297_s21, 4294963200  ;;  %s26_s0 = sadd.s32 1, %s579_s0   ;;  %s835_s13 = smov %s563_s14 }
  0x5a   : > { %p23_p2 = scmp.ge.s32.totalorder %s26_s0, 4   ;;  %s836_s14 = smov %s567_s15 }
  0x5b   : > { %s837_s15 = smov %s660_s26  ;;  %s838_s16 = smov %s575_s17 }
  0x5c   : > { %s839_s17 = smov %s841_s20  ;;  %25 = sbr.rel (!%p23_p2) target bundleno = 12 (0xc), region = 69 }
  0x61   :  { %303 = vsyncpa [#allocation5], 1 }
  0x62   :  { %305 = vsyncpa [#allocation5 + $0x1], 1 }
  0x63   :  { %306 = vsyncpa [#allocation6], 1 }
  0x64   :  { %308 = vsyncpa [#allocation6 + $0x1], 1 }

</bundles_post_ra>
